<compile_context>
chip_gen: v7x
topology: tpu7x:2x2x1
jax: 0.10.0
libtpu: 0.0.40
codegen_flags: <defaults>
</compile_context>

<pallas_src>
import functools
import math

import jax
import jax.numpy as jnp
from jax import lax
from jax.experimental import pallas as pl
from jax.experimental.pallas import tpu as pltpu


def _round_up(a, b):
    return (a + b - 1) // b * b


# ----------------------------------------------------------------------------
# One-time host-side capability / hardware queries
# ----------------------------------------------------------------------------

_SINGLE_BUF_OK = None


def _single_buffer_consts_supported() -> bool:
    """One-time capability check for pipeline_mode=pl.Buffered(1).

    Constant-index blocks never change, so one resident buffer suffices and
    halves their VMEM footprint.  Probed once with a tiny kernel compile so
    the real kernel never needs an execution-wrapping try/except.
    """
    global _SINGLE_BUF_OK
    if _SINGLE_BUF_OK is not None:
        return _SINGLE_BUF_OK
    ok = hasattr(pl, "Buffered")
    if ok:
        try:
            def _probe(a_ref, o_ref):
                o_ref[...] = a_ref[...] * 2.0

            fn = pl.pallas_call(
                _probe,
                out_shape=jax.ShapeDtypeStruct((16, 128), jnp.float32),
                grid=(2,),
                in_specs=[pl.BlockSpec((8, 128), lambda i: (0, 0),
                                       pipeline_mode=pl.Buffered(1))],
                out_specs=pl.BlockSpec((8, 128), lambda i: (i, 0)),
            )
            jax.jit(fn).lower(
                jax.ShapeDtypeStruct((8, 128), jnp.float32)).compile()
            ok = True
        except Exception:
            ok = False
    _SINGLE_BUF_OK = ok
    return ok


def _tpu_vmem_bytes() -> int:
    """Physical VMEM per TensorCore; conservative 64 MiB (v7x) fallback."""
    try:
        return int(pltpu.get_tpu_info().vmem_capacity_bytes)
    except Exception:
        return 64 * 1024 * 1024


# ----------------------------------------------------------------------------
# Parameter prep (host-side, once per parameter set -- NOT in the hot path)
# ----------------------------------------------------------------------------

def prepare_params(params, *, param_dtype=jnp.bfloat16, slot_pad=128):
    """Transpose / cast / slot-pad the module parameters once.

    param_dtype: MXU dtype for Wq / Wp / memory.  bfloat16 is recommended on
    v5e, v6e and v7x (bf16-native MXU, half the resident weight VMEM); the
    kernel accumulates in f32 either way.
    """
    D = params["wq"].shape[0]
    S = params["memory"].shape[0]
    S_pad = _round_up(max(S, 1), slot_pad)

    mem = params["memory"].astype(param_dtype)                     # (S, D)
    if S_pad != S:
        mem = jnp.pad(mem, ((0, S_pad - S), (0, 0)))               # (S_pad, D)
    # Additive score mask: 0 on real slots, -1e30 on padding (softmax -> 0).
    mask = jnp.where(jnp.arange(S_pad) < S, 0.0, -1e30)
    mask = mask.astype(jnp.float32).reshape(1, S_pad)

    return {
        "wq_t": params["wq"].T.astype(param_dtype),                # (D, D) (in,out)
        "bq": params["bq"].reshape(1, D).astype(jnp.float32),
        "mem": mem,                                                # (S_pad, D)
        "mask": mask,                                              # (1, S_pad)
        "wp_t": params["wp"].T.astype(param_dtype),                # (D, D)
        "bp": params["bp"].reshape(1, D).astype(jnp.float32),
    }


# ----------------------------------------------------------------------------
# Kernel
# ----------------------------------------------------------------------------

def _man_kernel(x_ref, wq_ref, bq_ref, mem_ref, mask_ref, wp_ref, bp_ref,
                o_ref, *, inv_sqrt_d):
    """One (tm, D) row-tile of the flattened (B*T, D) input."""
    x = x_ref[...]                                                  # (tm, D)

    # query = x @ Wq^T + bq   (f32 accumulation on the MXU)
    q = jnp.dot(x.astype(wq_ref.dtype), wq_ref[...],
                preferred_element_type=jnp.float32) + bq_ref[...]

    # scores = (q @ memory^T) / sqrt(D); transposed contraction on the single
    # (S_pad, D) memory block -- no separate memory^T stream needed.
    scores = lax.dot_general(
        q.astype(mem_ref.dtype), mem_ref[...],
        dimension_numbers=(((1,), (1,)), ((), ())),
        preferred_element_type=jnp.float32)                         # (tm, S_pad)
    # Scale in f32 (free under MXU slack); mask kills the padded slots.
    scores = scores * inv_sqrt_d + mask_ref[...]

    # softmax over memory slots (f32).  approx reciprocal rides the EUP slot;
    # ~1e-3-level relative error -- flag if reused where tighter accuracy is
    # required.
    m = jnp.max(scores, axis=-1, keepdims=True)
    p = jnp.exp(scores - m)
    attn = p * pl.reciprocal(jnp.sum(p, axis=-1, keepdims=True), approx=True)

    # memory readout, output projection, bias, residual.
    mo = jnp.dot(attn.astype(mem_ref.dtype), mem_ref[...],
                 preferred_element_type=jnp.float32)                # (tm, D)
    out = jnp.dot(mo.astype(wp_ref.dtype), wp_ref[...],
                  preferred_element_type=jnp.float32) + bp_ref[...]
    o_ref[...] = (x.astype(jnp.float32) + out).astype(o_ref.dtype)


# ----------------------------------------------------------------------------
# Forward wrapper (pure / jit-friendly; no host sync, no host-side padding)
# ----------------------------------------------------------------------------

def man_forward(x, prepped, *, tile_m=None, act_dtype=None):
    """x: (B, T, D).  prepped: output of prepare_params().

    tile_m: rows of the flattened (B*T, D) input per grid step.  Default is
            generation-aware (512 on 128 MiB-VMEM chips, 256 on v7x).
    act_dtype: streaming dtype for x / output (e.g. jnp.bfloat16 on v6e to get
            off the HBM roofline); compute stays f32 inside the kernel.
    """
    B, T, D = x.shape
    N = B * T

    wq_t, wp_t = prepped["wq_t"], prepped["wp_t"]
    bq, bp = prepped["bq"], prepped["bp"]
    mem, mask = prepped["mem"], prepped["mask"]
    S_pad = mem.shape[0]
    inv_sqrt_d = 1.0 / math.sqrt(D)

    if act_dtype is None:
        act_dtype = x.dtype
    act_dtype = jnp.dtype(act_dtype)
    row_align = 16 if act_dtype.itemsize == 2 else 8

    # --- generation-aware row tiling ---------------------------------------
    vmem_phys = _tpu_vmem_bytes()
    if tile_m is None:
        tile_m = 512 if vmem_phys >= (100 << 20) else 256   # v5e/v6e vs v7x
    tm = max(row_align, min(_round_up(tile_m, row_align),
                            _round_up(N, row_align)))
    # Keep >= 2 grid steps when possible so ("parallel",) feeds both v7x TCs.
    if N > row_align and pl.cdiv(N, tm) < 2:
        tm = max(row_align, _round_up(pl.cdiv(N, 2), row_align))
    grid = (pl.cdiv(N, tm),)   # ragged tail handled by masked writes

    # --- VMEM budget computed from the actual resident buffers -------------
    single_buf = _single_buffer_consts_supported()
    n_const_buf = 1 if single_buf else 2
    p_size = jnp.dtype(wq_t.dtype).itemsize
    a_size = act_dtype.itemsize
    need = (2 * tm * D * a_size * 2                               # x + out (dbl buf)
            + n_const_buf * (2 * D * D + S_pad * D) * p_size      # Wq^T, Wp^T, mem
            + n_const_buf * (2 * D + S_pad) * 4)                  # bq, bp, mask
    headroom = 16 << 20
    vmem_limit = int(min(max(vmem_phys - headroom, 32 << 20),     # <=48 MiB on v7x
                         max(need + headroom, 32 << 20)))
    # NOTE: for very large D (bf16 weights beyond D~3.5k on v7x) the resident
    # (D, D) projections no longer fit VMEM; a weight-tiled variant (extra grid
    # axis over the projection dims) would be needed.
    # TODO(synk): weight-tiled path for very large n_embd.

    const_kw = dict(pipeline_mode=pl.Buffered(1)) if single_buf else {}

    def const_spec(shape):
        return pl.BlockSpec(shape, lambda i: (0, 0), **const_kw)

    kernel = functools.partial(_man_kernel, inv_sqrt_d=inv_sqrt_d)

    out2 = pl.pallas_call(
        kernel,
        out_shape=jax.ShapeDtypeStruct((N, D), act_dtype),
        grid_spec=pltpu.PrefetchScalarGridSpec(
            num_scalar_prefetch=0,
            grid=grid,
            in_specs=[
                pl.BlockSpec((tm, D), lambda i: (i, 0)),   # x row tile
                const_spec((D, D)),                        # Wq^T
                const_spec((1, D)),                        # bq
                const_spec((S_pad, D)),                    # memory (zero-padded)
                const_spec((1, S_pad)),                    # additive slot mask
                const_spec((D, D)),                        # Wp^T
                const_spec((1, D)),                        # bp
            ],
            out_specs=pl.BlockSpec((tm, D), lambda i: (i, 0)),
        ),
        compiler_params=pltpu.CompilerParams(
            dimension_semantics=("parallel",),
            vmem_limit_bytes=vmem_limit,
        ),
    )(x.reshape(N, D).astype(act_dtype), wq_t, bq, mem, mask, wp_t, bp)

    return out2.reshape(B, T, D)


# ----------------------------------------------------------------------------
# Synthetic parameters + pure-JAX reference
# ----------------------------------------------------------------------------

def init_params(key, n_embd, num_memory_slots=32):
    """Deterministic synthetic parameters matching the module's shapes."""
    kmem, kwq, kbq, kwp, kbp = jax.random.split(key, 5)
    bound = 1.0 / math.sqrt(n_embd)
    return {
        # nn.Parameter(torch.randn(1, num_memory_slots, n_embd)) -> (S, D)
        "memory": jax.random.normal(kmem, (num_memory_slots, n_embd), jnp.float32),
        # nn.Linear(n_embd, n_embd): weight (out, in), bias (out,)
        "wq": jax.random.uniform(kwq, (n_embd, n_embd), jnp.float32, -bound, bound),
        "bq": jax.random.uniform(kbq, (n_embd,), jnp.float32, -bound, bound),
        "wp": jax.random.uniform(kwp, (n_embd, n_embd), jnp.float32, -bound, bound),
        "bp": jax.random.uniform(kbp, (n_embd,), jnp.float32, -bound, bound),
    }


def _reference(x, params):
    """Pure-JAX reference mirroring the PyTorch forward (exact f32 math)."""
    D = x.shape[-1]
    mem = params["memory"]                                   # (S, D)
    q = x @ params["wq"].T + params["bq"]
    attn = (q @ mem.T) / math.sqrt(D)
    w = jax.nn.softmax(attn, axis=-1)
    mo = w @ mem
    mo = mo @ params["wp"].T + params["bp"]
    return x + mo


# ----------------------------------------------------------------------------
# Demo / self-test
# ----------------------------------------------------------------------------

if __name__ == "__main__":
    key = jax.random.PRNGKey(0)
    kx, kp = jax.random.split(key)

    B, T, D = 2, 8, 32          # batch, seq, n_embd (small demo shapes)
    # NOTE: real configs should keep D a multiple of 128 for lane-dense stores;
    # D=32 is the small demo size.
    x = jax.random.normal(kx, (B, T, D), jnp.float32)
    params = init_params(kp, D, num_memory_slots=32)
    ref = _reference(x, params)

    _single_buffer_consts_supported()   # prime the one-time capability probe

    fwd = jax.jit(man_forward)

    # f32 weights + f32 activations (tight check).
    prepped_f32 = prepare_params(params, param_dtype=jnp.float32)
    out_f32 = jax.block_until_ready(fwd(x, prepped_f32))
    assert out_f32.shape == (B, T, D)
    assert jnp.allclose(out_f32, ref, atol=2e-3, rtol=2e-3), "f32 mismatch"

    # bf16 weights (recommended on v5e/v6e/v7x), f32 activations.
    prepped_bf16 = prepare_params(params, param_dtype=jnp.bfloat16)
    out_bf16 = jax.block_until_ready(fwd(x, prepped_bf16))
    assert jnp.allclose(out_bf16, ref, atol=5e-2, rtol=5e-2), "bf16-weight mismatch"

    # Ragged row count (B*T not a multiple of the row tile) exercises the
    # masked tail write (no host-side padding anywhere).
    x_r = jax.random.normal(jax.random.PRNGKey(1), (2, 7, D), jnp.float32)
    ref_r = _reference(x_r, params)
    out_r = jax.block_until_ready(fwd(x_r, prepped_f32))
    assert out_r.shape == (2, 7, D)
    assert jnp.allclose(out_r, ref_r, atol=2e-3, rtol=2e-3), "ragged-tail mismatch"

    # bf16 weights + bf16 activation streaming (v6e HBM-roofline option).
    fwd_bf16_act = jax.jit(functools.partial(man_forward, act_dtype=jnp.bfloat16))
    out_a = jax.block_until_ready(fwd_bf16_act(x, prepped_bf16))
    assert out_a.dtype == jnp.bfloat16
    assert jnp.allclose(out_a.astype(jnp.float32), ref, atol=1e-1, rtol=1e-1), \
        "bf16-activation mismatch"

    print("KERNEL_OK")
</pallas_src>

<mosaic_0001>
module attributes {stable_mosaic.version = 11 : i64} {
  func.func @_man_kernel(%arg0: i32, %arg1: memref<8x32xf32, #tpu.memory_space<vmem>>, %arg2: memref<32x32xf32, #tpu.memory_space<vmem>>, %arg3: memref<1x32xf32, #tpu.memory_space<vmem>>, %arg4: memref<128x32xf32, #tpu.memory_space<vmem>>, %arg5: memref<1x128xf32, #tpu.memory_space<vmem>>, %arg6: memref<32x32xf32, #tpu.memory_space<vmem>>, %arg7: memref<1x32xf32, #tpu.memory_space<vmem>>, %arg8: memref<8x32xf32, #tpu.memory_space<vmem>>) attributes {dimension_semantics = [#tpu.dimension_semantics<parallel>], iteration_bounds = array<i64: 2>, scalar_prefetch = 0 : i64, scratch_operands = 0 : i64, tpu.core_type = #tpu.core_type<tc>, window_params = [{transform_indices = @transform_0, window_bounds = array<i64: 8, 32>}, {pipeline_mode = #tpu.pipeline_mode<synchronous>, transform_indices = @transform_1, window_bounds = array<i64: 32, 32>}, {pipeline_mode = #tpu.pipeline_mode<synchronous>, transform_indices = @transform_2, window_bounds = array<i64: 1, 32>}, {pipeline_mode = #tpu.pipeline_mode<synchronous>, transform_indices = @transform_3, window_bounds = array<i64: 128, 32>}, {pipeline_mode = #tpu.pipeline_mode<synchronous>, transform_indices = @transform_4, window_bounds = array<i64: 1, 128>}, {pipeline_mode = #tpu.pipeline_mode<synchronous>, transform_indices = @transform_5, window_bounds = array<i64: 32, 32>}, {pipeline_mode = #tpu.pipeline_mode<synchronous>, transform_indices = @transform_6, window_bounds = array<i64: 1, 32>}, {transform_indices = @transform_7, window_bounds = array<i64: 8, 32>}]} {
    %c0 = arith.constant 0 : index
    %c0_0 = arith.constant 0 : index
    %0 = vector.load %arg1[%c0, %c0_0] : memref<8x32xf32, #tpu.memory_space<vmem>>, vector<8x32xf32>
    %c0_1 = arith.constant 0 : index
    %c0_2 = arith.constant 0 : index
    %1 = vector.load %arg2[%c0_1, %c0_2] : memref<32x32xf32, #tpu.memory_space<vmem>>, vector<32x32xf32>
    %cst = arith.constant dense<0.000000e+00> : vector<8x32xf32>
    %2 = tpu.matmul %0, %1, %cst {dimension_numbers = #tpu.dot_dimension_numbers<[1], [0], [0], [1], [0, 0, 1, 1], [], []>} : vector<8x32xf32>, vector<32x32xf32>, vector<8x32xf32> -> vector<8x32xf32>
    %c0_3 = arith.constant 0 : index
    %c0_4 = arith.constant 0 : index
    %3 = vector.load %arg3[%c0_3, %c0_4] : memref<1x32xf32, #tpu.memory_space<vmem>>, vector<1x32xf32>
    %4 = vector.broadcast %3 : vector<1x32xf32> to vector<8x32xf32>
    %5 = arith.addf %2, %4 : vector<8x32xf32>
    %c0_5 = arith.constant 0 : index
    %c0_6 = arith.constant 0 : index
    %6 = vector.load %arg4[%c0_5, %c0_6] : memref<128x32xf32, #tpu.memory_space<vmem>>, vector<128x32xf32>
    %cst_7 = arith.constant dense<0.000000e+00> : vector<8x128xf32>
    %7 = tpu.matmul %5, %6, %cst_7 {dimension_numbers = #tpu.dot_dimension_numbers<[1], [1], [0], [0], [0, 0, 1, 0], [], []>} : vector<8x32xf32>, vector<128x32xf32>, vector<8x128xf32> -> vector<8x128xf32>
    %cst_8 = arith.constant 0.176776692 : f32
    %8 = vector.broadcast %cst_8 : f32 to vector<8x128xf32>
    %9 = arith.mulf %7, %8 : vector<8x128xf32>
    %c0_9 = arith.constant 0 : index
    %c0_10 = arith.constant 0 : index
    %10 = vector.load %arg5[%c0_9, %c0_10] : memref<1x128xf32, #tpu.memory_space<vmem>>, vector<1x128xf32>
    %11 = vector.broadcast %10 : vector<1x128xf32> to vector<8x128xf32>
    %12 = arith.addf %9, %11 : vector<8x128xf32>
    %cst_11 = arith.constant dense<0xFF800000> : vector<8xf32>
    %13 = vector.multi_reduction <maximumf>, %12, %cst_11 [1] : vector<8x128xf32> to vector<8xf32>
    %14 = vector.shape_cast %13 : vector<8xf32> to vector<8x1xf32>
    %15 = vector.broadcast %14 : vector<8x1xf32> to vector<8x128xf32>
    %16 = arith.subf %12, %15 : vector<8x128xf32>
    %17 = math.exp %16 : vector<8x128xf32>
    %cst_12 = arith.constant dense<0.000000e+00> : vector<8xf32>
    %18 = vector.multi_reduction <add>, %17, %cst_12 [1] : vector<8x128xf32> to vector<8xf32>
    %19 = vector.shape_cast %18 : vector<8xf32> to vector<8x1xf32>
    %20 = tpu.reciprocal %19 {approx = true} : vector<8x1xf32> -> vector<8x1xf32>
    %21 = vector.broadcast %20 : vector<8x1xf32> to vector<8x128xf32>
    %22 = arith.mulf %17, %21 : vector<8x128xf32>
    %c0_13 = arith.constant 0 : index
    %c0_14 = arith.constant 0 : index
    %23 = vector.load %arg4[%c0_13, %c0_14] : memref<128x32xf32, #tpu.memory_space<vmem>>, vector<128x32xf32>
    %cst_15 = arith.constant dense<0.000000e+00> : vector<8x32xf32>
    %24 = tpu.matmul %22, %23, %cst_15 {dimension_numbers = #tpu.dot_dimension_numbers<[1], [0], [0], [1], [0, 0, 1, 1], [], []>} : vector<8x128xf32>, vector<128x32xf32>, vector<8x32xf32> -> vector<8x32xf32>
    %c0_16 = arith.constant 0 : index
    %c0_17 = arith.constant 0 : index
    %25 = vector.load %arg6[%c0_16, %c0_17] : memref<32x32xf32, #tpu.memory_space<vmem>>, vector<32x32xf32>
    %cst_18 = arith.constant dense<0.000000e+00> : vector<8x32xf32>
    %26 = tpu.matmul %24, %25, %cst_18 {dimension_numbers = #tpu.dot_dimension_numbers<[1], [0], [0], [1], [0, 0, 1, 1], [], []>} : vector<8x32xf32>, vector<32x32xf32>, vector<8x32xf32> -> vector<8x32xf32>
    %c0_19 = arith.constant 0 : index
    %c0_20 = arith.constant 0 : index
    %27 = vector.load %arg7[%c0_19, %c0_20] : memref<1x32xf32, #tpu.memory_space<vmem>>, vector<1x32xf32>
    %28 = vector.broadcast %27 : vector<1x32xf32> to vector<8x32xf32>
    %29 = arith.addf %26, %28 : vector<8x32xf32>
    %30 = arith.addf %0, %29 : vector<8x32xf32>
    %c0_21 = arith.constant 0 : index
    %c0_22 = arith.constant 0 : index
    %31 = vector.load %arg8[%c0_21, %c0_22] : memref<8x32xf32, #tpu.memory_space<vmem>>, vector<8x32xf32>
    tpu.vector_store %arg8[%c0_21, %c0_22], %30 {strides = array<i32>} : memref<8x32xf32, #tpu.memory_space<vmem>>, vector<8x32xf32>,
    return
  }
  func.func @transform_0(%arg0: i32) -> (i32, i32) {
    %c0_i32 = arith.constant 0 : i32
    %c0_i32_0 = arith.constant 0 : i32
    return %arg0, %c0_i32 : i32, i32
  }
  func.func @transform_1(%arg0: i32) -> (i32, i32) {
    %c0_i32 = arith.constant 0 : i32
    %c0_i32_0 = arith.constant 0 : i32
    %c0_i32_1 = arith.constant 0 : i32
    return %c0_i32, %c0_i32_0 : i32, i32
  }
  func.func @transform_2(%arg0: i32) -> (i32, i32) {
    %c0_i32 = arith.constant 0 : i32
    %c0_i32_0 = arith.constant 0 : i32
    %c0_i32_1 = arith.constant 0 : i32
    return %c0_i32, %c0_i32_0 : i32, i32
  }
  func.func @transform_3(%arg0: i32) -> (i32, i32) {
    %c0_i32 = arith.constant 0 : i32
    %c0_i32_0 = arith.constant 0 : i32
    %c0_i32_1 = arith.constant 0 : i32
    return %c0_i32, %c0_i32_0 : i32, i32
  }
  func.func @transform_4(%arg0: i32) -> (i32, i32) {
    %c0_i32 = arith.constant 0 : i32
    %c0_i32_0 = arith.constant 0 : i32
    %c0_i32_1 = arith.constant 0 : i32
    return %c0_i32, %c0_i32_0 : i32, i32
  }
  func.func @transform_5(%arg0: i32) -> (i32, i32) {
    %c0_i32 = arith.constant 0 : i32
    %c0_i32_0 = arith.constant 0 : i32
    %c0_i32_1 = arith.constant 0 : i32
    return %c0_i32, %c0_i32_0 : i32, i32
  }
  func.func @transform_6(%arg0: i32) -> (i32, i32) {
    %c0_i32 = arith.constant 0 : i32
    %c0_i32_0 = arith.constant 0 : i32
    %c0_i32_1 = arith.constant 0 : i32
    return %c0_i32, %c0_i32_0 : i32, i32
  }
  func.func @transform_7(%arg0: i32) -> (i32, i32) {
    %c0_i32 = arith.constant 0 : i32
    %c0_i32_0 = arith.constant 0 : i32
    return %arg0, %c0_i32 : i32, i32
  }
}

</mosaic_0001>

<bundles_post_ra>
// kernel: man_forward.1
= control target key start
LH: loop header
LB: loop body
LE: loop exit
PB: predicated region body
PF: predicated region fallthrough
CT: control target
= control target key end

     0   :  { %12 = vsyncpa [#allocation3], 0  ;;  %s1373_s0 = inlined_call_operand.vmem [shape: f32[16,32], index: 0, kind: input, shape index: {}]   ;;  %s1374_s1 = inlined_call_operand.vmem [shape: f32[32,32], index: 1, kind: input, shape index: {}]   ;;  %s1375_s2 = inlined_call_operand.vmem [shape: f32[1,32], index: 2, kind: input, shape index: {}]   ;;  %s1376_s3 = inlined_call_operand.vmem [shape: f32[128,32], index: 3, kind: input, shape index: {}]   ;;  %s1377_s4 = inlined_call_operand.vmem [shape: f32[1,128], index: 4, kind: input, shape index: {}]   ;;  %s1378_s5 = inlined_call_operand.vmem [shape: f32[32,32], index: 5, kind: input, shape index: {}]   ;;  %s1379_s6 = inlined_call_operand.vmem [shape: f32[1,32], index: 6, kind: input, shape index: {}]   ;;  %s1380_s7 = inlined_call_operand.hbm [shape: f32[16,32], index: 7, kind: output, shape index: {}]  }
   0x1   :  { %14 = vsyncpa [#allocation3 + $0x1], 0  ;;  %s1134_s24 = smov 0   ;;  %s1136_s25 = smov 0  }
   0x2   :  { %s1138_s26 = smov 0   ;;  %s1140_s27 = smov 0  }
   0x3 LB: > { %s1155_s28 = sadd.s32 4294967295, %s1088_s27   ;;  %s744_s29 = sadd.s32 4294967294, %s1088_s27   ;;  %s1088_s27 = sphi %s1140_s27, %s1388_s27   ;;  %s1084_s26 = sphi %s1138_s26, %s1387_s26   ;;  %s1080_s25 = sphi %s1136_s25, %s1386_s25   ;;  %s1076_s24 = sphi %s1134_s24, %s1385_s24  }
   0x4   : > { %s1159_s30 = sadd.s32 1, %s1088_s27   ;;  %s179_s8 = sadd.s32 1, %s1084_s26 }
   0x5   : > { %s176_s9 = ssub.s32 %s1088_s27, %s1159_s30  ;;  %p189_p0 = scmp.ne.s32.totalorder %s1084_s26, %s1080_s25 }
   0x6   : > { %p177_p1 = scmp.eq.s32.totalorder %s176_s9, 0  ;;  %p190_p2 = scmp.eq.s32.totalorder %s1155_s28, 1 }
   0x7   : > { %p195_p3 = scmp.ne.s32.totalorder %s1080_s25, %s1076_s24  ;;  %p196_p4 = scmp.eq.s32.totalorder %s744_s29, 1 }
   0x8   : > { %s1170_s10 = scalar_select %p177_p1, %s1084_s26, %s179_s8  }
   0x9   : > { %p1172_p5 = por %p190_p2, %p189_p0  ;;  %p1176_p6 = por %p196_p4, %p195_p3 }
   0xa   : > { %p747_p7 = scmp.ge.s32.totalorder %s1088_s27, 1  ;;  %p239_p8 = scmp.lt.s32.totalorder %s1088_s27, 3 }
   0xc   : > { %p240_p9 = pnand %p747_p7, %p239_p8 }
   0xd   : > { %v275_v0 = vld [vmem:[%s1374_s1] sm:$0xff] (!%p240_p9)  ;;  %v276_v1 = vld [vmem:[%s1374_s1 + $0x8] sm:$0xff] (!%p240_p9)  ;;  %v277_v2 = vld [vmem:[%s1374_s1 + $0x10] sm:$0xff] (!%p240_p9)  ;;  %v1090_v3 = vmov (!%p240_p9), 0.0|0.0   ;;  %vm1091_vm0 = vmmov (!%p240_p9), 0   ;;  %v1092_v6 = vmov (!%p240_p9), 0.0  }
   0xe   : > { %243 = sbr.rel (%p240_p9) target bundleno = 1210 (0x4ba), region = 48  ;;  %912 = vmatprep.subr.bf16.mxu0 (!%p240_p9), %v1090_v3  ;;  %v913_v4 = vpack.c.bf16 (!%p240_p9), %v276_v1, %v275_v0  ;;  %v278_v5 = vld [vmem:[%s1374_s1 + $0x18] sm:$0xff] (!%p240_p9)  ;;  %828 = vmatprep.mubr.msk.f32.mxu0 (!%p240_p9), %vm1091_vm0, %v1092_v6  ;;  %p270_p10 = scmp.lt.s32.totalorder (!%p240_p9), %s1155_s28, 1  ;;  %vm286_vm1 = vcmask (!%p240_p9), 261120   ;;  %v360_v7 = vld [vmem:[%s1376_s3] sm:$0xff] (!%p240_p9)  ;;  %v361_v8 = vld [vmem:[%s1376_s3 + $0x8] sm:$0xff] (!%p240_p9) }
   0xf   : > { %vm1206_vm2 = vmpackc.low (!%p240_p9), %vm286_vm1, %vm286_vm1  ;;  %918 = vmatprep.subr.bf16.mxu1 (!%p240_p9), %v1090_v3  ;;  %v919_v10 = vpack.c.bf16 (!%p240_p9), %v361_v8, %v360_v7  ;;  %863 = vmatprep.mubr.msk.f32.mxu1 (!%p240_p9), %vm1091_vm0, %v1092_v6  ;;  %v916_v11 = vpack.c.bf16 (!%p240_p9), %v278_v5, %v277_v2  ;;  %v362_v12 = vld [vmem:[%s1376_s3 + $0x10] sm:$0xff] (!%p240_p9)  ;;  %v363_v13 = vld [vmem:[%s1376_s3 + $0x18] sm:$0xff] (!%p240_p9)  ;;  %s267_s14 = sand.u32 (!%p240_p9), 1, %s1080_s25   ;;  %s773_s18 = sshll.u32 (!%p240_p9), %s1155_s28, 7 }
  0x10   : > { %914 = vmatpush3.bf16.msra.mxu0 (!%p240_p9), %v913_v4  ;;  %v923_v15 = vpack.c.bf16 (!%p240_p9), %v363_v13, %v362_v12  ;;  %v364_v16 = vld [vmem:[%s1376_s3 + $0x20] sm:$0xff] (!%p240_p9)  ;;  %v365_v17 = vld [vmem:[%s1376_s3 + $0x28] sm:$0xff] (!%p240_p9)  ;;  %v366_v19 = vld [vmem:[%s1376_s3 + $0x30] sm:$0xff] (!%p240_p9)  ;;  %s748_s15 = sshll.u32 (!%p240_p9), %s267_s14, 3  ;;  %s1330_s23 = scalar_lea.hbm (!%p240_p9), %s1380_s7, %s773_s18 }
  0x11   : > { %915 = vmatprep.subr.bf16.mxu0 (!%p240_p9), %v1090_v3  ;;  %921 = vmatpush3.bf16.xpose.msk.msra.mxu1 (!%p240_p9), %vm1206_vm2, %v919_v10  ;;  %v927_v18 = vpack.c.bf16 (!%p240_p9), %v365_v17, %v364_v16  ;;  %v367_v20 = vld [vmem:[%s1376_s3 + $0x38] sm:$0xff] (!%p240_p9)  ;;  %v368_v22 = vld [vmem:[%s1376_s3 + $0x40] sm:$0xff] (!%p240_p9)  ;;  %v369_v23 = vld [vmem:[%s1376_s3 + $0x48] sm:$0xff] (!%p240_p9)  ;;  %s672_s29 = scalar_lea.sflag (!%p240_p9), [#allocation3], %s267_s14 }
  0x12   : > { %922 = vmatprep.subr.bf16.mxu1 (!%p240_p9), %v1090_v3  ;;  %v931_v21 = vpack.c.bf16 (!%p240_p9), %v367_v20, %v366_v19  ;;  %v935_v24 = vpack.c.bf16 (!%p240_p9), %v369_v23, %v368_v22  ;;  %v370_v25 = vld [vmem:[%s1376_s3 + $0x50] sm:$0xff] (!%p240_p9)  ;;  %v371_v26 = vld [vmem:[%s1376_s3 + $0x58] sm:$0xff] (!%p240_p9)  ;;  %v372_v28 = vld [vmem:[%s1376_s3 + $0x60] sm:$0xff] (!%p240_p9) }
  0x13   : > { %v939_v27 = vpack.c.bf16 (!%p240_p9), %v371_v26, %v370_v25  ;;  %v373_v29 = vld [vmem:[%s1376_s3 + $0x68] sm:$0xff] (!%p240_p9)  ;;  %v374_v31 = vld [vmem:[%s1376_s3 + $0x70] sm:$0xff] (!%p240_p9)  ;;  %v375_v32 = vld [vmem:[%s1376_s3 + $0x78] sm:$0xff] (!%p240_p9) }
  0x14   : > { %917 = vmatpush3.bf16.msra.mxu0 (!%p240_p9), %v916_v11  ;;  %v943_v30 = vpack.c.bf16 (!%p240_p9), %v373_v29, %v372_v28  ;;  %v947_v33 = vpack.c.bf16 (!%p240_p9), %v375_v32, %v374_v31  ;;  %v750_v34 = vld [vmem:[%s1375_s2] ss:$0 sm:$0xff] (!%p240_p9)  ;;  %v586_v49 = vld [vmem:[%s1378_s5 + $0x8] sm:$0xff] (!%p240_p9)  ;;  %v587_v53 = vld [vmem:[%s1378_s5 + $0x10] sm:$0xff] (!%p240_p9) }
  0x15   : > { %s271_s8 = scalar_select %p270_p10, %s1155_s28, 1  ;;  %950 = vmatprep.subr.bf16.mxu0 %v1090_v3  ;;  %v769_v39 = vld [vmem:[%s1377_s4] ss:$0 sm:$0xff]  ;;  %v588_v54 = vld [vmem:[%s1378_s5 + $0x18] sm:$0xff] }
  0x16   : > { %v585_v48 = vld [vmem:[%s1378_s5] sm:$0xff]  ;;  %v978_v55 = vpack.c.bf16 %v588_v54, %v587_v53 }
  0x17   : > { %s749_s9 = sshll.u32 %s271_s8, 3  ;;  %v975_v51 = vpack.c.bf16 %v586_v49, %v585_v48  ;;  %v770_v58 = vld [vmem:[%s1379_s6] ss:$0 sm:$0xff]  ;;  %s1093_s8 = smov [#allocation2]  }
  0x18   : > { %s273_s19 = scalar_lea.vmem %s1373_s0, %s749_s9  ;;  %s1030_s9 = sshll.u32 %s1093_s8, 4  ;;  %s1031_s9 = int_to_ptr.vmem [resolvable:$false] %s1030_s9 }
  0x19   : > { %v1227_v14 = vld [vmem:[%s273_s19] sm:$0xff]  ;;  %925 = vmatpush3.bf16.xpose.msk.msra.mxu1 %vm1206_vm2, %v923_v15  ;;  %s269_s19 = scalar_lea.vmem [#allocation2], %s748_s15  ;;  %s1032_s13 = scalar_lea.vmem %s1031_s9, 256 }
  0x1a   : > { %829 = vmatmul.mubr.msk.f32.vlgmr.msra.gmra.mrb[0].mxu0 %vm286_vm1, %v1227_v14  ;;  %926 = vmatprep.subr.bf16.mxu1 %v1090_v3  ;;  %s685_s20 = sshll.u32 %s269_s19, 4  ;;  %s1332_s20 = int_to_ptr.vmem [resolvable:$true] %s685_s20 }
  0x1b   : > { %952 = vmatpush3.bf16.msra.mxu0 %v919_v10  ;;  %898 = vmatprep.mubr.msk.f32.mxu0 %vm1091_vm0, %v1092_v6  ;;  %s1026_s28 = scalar_lea.vmem %s1332_s20, 128  ;;  %p1033_p0 = scmp.lt.s32.totalorder %s1332_s20, %s1031_s9 }
  0x1c   : > { %953 = vmatprep.subr.bf16.mxu0 %v1090_v3  ;;  %p1027_p11 = scmp.ne.s32.totalorder %s1332_s20, %s1026_s28  ;;  %p1034_p1 = scmp.lt.s32.totalorder %s1032_s13, %s1026_s28 }
  0x1e   : > { %p1028_p12 = pnand %p1027_p11, %p1172_p5  ;;  %p1035_p2 = por %p1034_p1, %p1033_p0 }
  0x1f   : > { %955 = vmatpush3.bf16.msra.mxu0 %v923_v15 }
  0x20   : > { %956 = vmatprep.subr.bf16.mxu0 %v1090_v3  ;;  %p1029_p13 = pneg %p1028_p12 }
  0x21   : > { %929 = vmatpush3.bf16.xpose.msk.msra.mxu1 %vm1206_vm2, %v927_v18 }
  0x22   : > { %930 = vmatprep.subr.bf16.mxu1 %v1090_v3  ;;  %p1036_p3 = pnand %p1035_p2, %p1029_p13 }
  0x23   : > { %958 = vmatpush3.bf16.msra.mxu0 %v927_v18 }
  0x24   : > { %959 = vmatprep.subr.bf16.mxu0 %v1090_v3 }
  0x27   : > { %961 = vmatpush3.bf16.msra.mxu0 %v931_v21 }
  0x28   : > { %962 = vmatprep.subr.bf16.mxu0 %v1090_v3 }
  0x29   : > { %933 = vmatpush3.bf16.xpose.msk.msra.mxu1 %vm1206_vm2, %v931_v21 }
  0x2a   : > { %934 = vmatprep.subr.bf16.mxu1 %v1090_v3 }
  0x2b   : > { %964 = vmatpush3.bf16.msra.mxu0 %v935_v24 }
  0x2c   : > { %965 = vmatprep.subr.bf16.mxu0 %v1090_v3 }
  0x2f   : > { %967 = vmatpush3.bf16.msra.mxu0 %v939_v27 }
  0x30   : > { %968 = vmatprep.subr.bf16.mxu0 %v1090_v3 }
  0x31   : > { %937 = vmatpush3.bf16.xpose.msk.msra.mxu1 %vm1206_vm2, %v935_v24 }
  0x32   : > { %938 = vmatprep.subr.bf16.mxu1 %v1090_v3 }
  0x33   : > { %970 = vmatpush3.bf16.msra.mxu0 %v943_v30 }
  0x34   : > { %971 = vmatprep.subr.bf16.mxu0 %v1090_v3 }
  0x37   : > { %973 = vmatpush3.bf16.msra.mxu0 %v947_v33 }
  0x38   : > { %974 = vmatprep.subr.bf16.mxu0 %v1090_v3 }
  0x39   : > { %941 = vmatpush3.bf16.xpose.msk.msra.mxu1 %vm1206_vm2, %v939_v27 }
  0x3a   : > { %942 = vmatprep.subr.bf16.mxu1 %v1090_v3 }
  0x41   : > { %945 = vmatpush3.bf16.xpose.msk.msra.mxu1 %vm1206_vm2, %v943_v30 }
  0x42   : > { %946 = vmatprep.subr.bf16.mxu1 %v1090_v3 }
  0x49   : > { %949 = vmatpush3.bf16.xpose.msk.msra.mxu1 %vm1206_vm2, %v947_v33 }
  0xed   : > { %v356_v35 = vpop.f32.mrb[0].mxu0 }
  0xee   : > { %v357_v36 = vadd.f32 %v750_v34, %v356_v35  ;;  %v830_v37 = vpop.f32.mrb[1].mxu0 }
  0xf0   : > { %864 = vmatmul.mubr.msk.f32.vlgmr.msra.gmra.mrb[0].mxu1 %vm286_vm1, %v357_v36 }
 0x1c3   : > { %v493_v38 = vpop.f32.mrb[0].mxu1 }
 0x1c4   : > { %v497_v40 = vmul.f32 0.17677669, %v493_v38  ;;  %v865_v41 = vpop.f32.mrb[1].mxu1 }
 0x1c6   : > { %v505_v42 = vadd.f32 %v769_v39, %v497_v40 }
 0x1c8   : > { %506 = vmax.xlane.f32.xlu0 %v505_v42 }
 0x255   : > { %v507_v43 = vpop.xlane.xlu0 %506 }
 0x256   : > { %v508_v44 = vsub.f32 %v505_v42, %v507_v43 }
 0x258   : > { %v509_v45 = vmul.f32 1.442695, %v508_v44 }
 0x25a   : > { %1022 = vpow2.f32 %v509_v45 }
 0x264   : > { %v1023_v46 = vpop.eup %1022 }
 0x265   : > { %511 = vadd.xlane.f32.xlu0 %v1023_v46 }
 0x2f2   : > { %v512_v47 = vpop.xlane.xlu0 %511 }
 0x2f3   : > { %1024 = vrcp.f32 %v512_v47 }
 0x2fd   : > { %v1025_v50 = vpop.eup %1024 }
 0x2fe   : > { %v514_v52 = vmul.f32 %v1025_v50, %v1023_v46 }
 0x300   : > { %899 = vmatmul.mubr.f32.vlgmr.msra.gmra.mrb[2].mxu0 %v514_v52 }
 0x301   : > { %976 = vmatpush3.bf16.msra.mxu0 %v975_v51  ;;  %909 = vmatprep.mubr.msk.f32.mxu0 %vm1091_vm0, %v1092_v6 }
 0x302   : > { %977 = vmatprep.subr.bf16.mxu0 %v1090_v3 }
 0x305   : > { %979 = vmatpush3.bf16.msra.mxu0 %v978_v55 }
 0x3d3   : > { %v581_v56 = vpop.f32.mrb[2].mxu0 }
 0x3d4   : > { %v900_v57 = vpop.f32.mrb[3].mxu0  ;;  %910 = vmatmul.mubr.msk.f32.vlgmr.msra.gmra.mrb[4].mxu0 %vm286_vm1, %v581_v56 }
 0x4a7   : > { %v665_v59 = vpop.f32.mrb[4].mxu0 }
 0x4a8   : > { %v666_v60 = vadd.f32 %v770_v58, %v665_v59  ;;  %v911_v61 = vpop.f32.mrb[5].mxu0 }
 0x4aa   : > { %v669_v62 = vadd.f32 %v666_v60, %v1227_v14 }
 0x4ac   : > { %670 = vst.msk [vmem:[%s269_s19] sm:$0xff] %vm286_vm1, %v669_v62 }
 0x4ad   : > { %1039 = shalt.err (!%p1036_p3)
}
 0x4ae   : > { %s1040_s14 = scalar_lea.hbm %s1330_s23, 128  ;;  %s1044_s17 = scalar_lea.hbm %s1380_s7, 256 }
 0x4af   : > { %p1041_p4 = scmp.ne.s32.totalorder %s1330_s23, %s1040_s14  ;;  %p1045_p9 = scmp.lt.u32.totalorder %s1330_s23, %s1380_s7 }
 0x4b0   : > { %p1046_p10 = scmp.lt.u32.totalorder %s1044_s17, %s1040_s14  ;;  %p1048_p12 = scmp.lt.u32.totalorder %s1040_s14, %s1330_s23 }
 0x4b1   : > { %p1042_p7 = pnand %p1041_p4, %p1172_p5 }
 0x4b2   : > { %p1047_p11 = por %p1046_p10, %p1045_p9 }
 0x4b3   : > { %p1043_p8 = pneg %p1042_p7 }
 0x4b4   : > { %p1049_p13 = por %p1048_p12, %p1047_p11 }
 0x4b6   : > { %p1050_p0 = pnand %p1049_p13, %p1043_p8 }
 0x4b8   : > { %1053 = shalt.err (!%p1050_p0)
}
 0x4b9   : > { %980 = dma.vmem_to_hbm [thread:$0]  (%p1172_p5), %s1332_s20, 128, %s1330_s23, %s672_s29  }
 0x4ba PF: > { %p986_p1 = scmp.ge.s32.totalorder %s1088_s27, 2  ;;  %s697_s21 = sand.u32 1, %s1076_s24  }
 0x4bb   : > { %s698_s22 = scalar_lea.sflag [#allocation3], %s697_s21 }
 0x4bc   : > { %p983_p2 = pnand %p986_p1, %p1176_p6 }
 0x4be   : > { %1071 = dma.done.wait (!%p983_p2), %s698_s22, 128  }
 0x4bf   : > { %1073 = vsyncadd (!%p983_p2), %s698_s22, 4294967168  ;;  %p17_p3 = scmp.ge.s32.totalorder %s1159_s30, 4   ;;  %s1385_s24 = smov %s1080_s25 }
 0x4c0   : > { %s1386_s25 = smov %s1084_s26  ;;  %s1387_s26 = smov %s1170_s10 }
 0x4c1   : > { %s1388_s27 = smov %s1159_s30  ;;  %19 = sbr.rel (!%p17_p3) target bundleno = 3 (0x3), region = 83 }
 0x4c8   :  { %703 = vsyncpa [#allocation3], 1 }
 0x4c9   :  { %705 = vsyncpa [#allocation3 + $0x1], 1 }

</bundles_post_ra>
